<compile_context>
chip_gen: v6e
topology: v6e:2x2x1
jax: 0.10.0
libtpu: 0.0.40
codegen_flags: <defaults>
</compile_context>

<pallas_src>
import math

import jax
import jax.numpy as jnp
from jax.experimental import pallas as pl
from jax.experimental.pallas import tpu as pltpu


def _round_up(x, m):
    return ((x + m - 1) // m) * m


def deepset_kernel(x_ref, w1_ref, b1_ref, w2_ref, b2_ref, wv_ref, bv_ref,
                   out_ref):
    # x_ref : (TILE_B, N*S)  one batch tile, agents flattened on lanes
    # w1_ref: (N*S, NHp)     block-diagonal W1, H-wide per-agent column blocks
    # b1_ref: (1, NHp)       b1 tiled per agent (f32), zero in padding
    # w2_ref: (NHp, Hp)      N vertically stacked copies of W2 (pool fused in)
    # b2_ref: (1, Hp)  wv_ref: (1, Hp)  bv_ref: (1, 1)  out_ref: (1, TILE_B)
    x = x_ref[...]

    # Layer 1 for ALL agents in a single 2-D MXU matmul; f32 accumulation.
    h1 = jnp.dot(x, w1_ref[...], preferred_element_type=jnp.float32)
    h1 = jnp.maximum(h1 + b1_ref[...], 0.0)                 # (TILE_B, NHp) f32

    # Permutation-invariant sum-pool fused into layer 2 (both are linear):
    #   sum_j h1[:, jH:(j+1)H] @ W2  ==  h1 @ vstack([W2] * N)
    h2 = jnp.dot(h1.astype(w2_ref.dtype), w2_ref[...],
                 preferred_element_type=jnp.float32)
    h2 = jnp.maximum(h2 + b2_ref[...], 0.0)                  # (TILE_B, Hp) f32

    # Value head, transposed: (1, Hp) . (TILE_B, Hp)^T -> (1, TILE_B) so the
    # batch dimension lands on the lane axis and the store is lane-dense.
    v = jax.lax.dot_general(wv_ref[...], h2, (((1,), (1,)), ((), ())),
                            preferred_element_type=jnp.float32)
    out_ref[...] = (v + bv_ref[...]).astype(out_ref.dtype)


def pack_deepset_params(w1, b1, w2, b2, wv, bv, *, n_agents,
                        compute_dtype=jnp.bfloat16):
    """One-time (load-time) parameter packing. Keep this OUT of the hot path.

    w1:[S,H], b1:[1,H], w2:[H,H], b2:[1,H], wv:[H,1], bv:[1,1]
    (weights stored transposed relative to nn.Linear.weight).
    """
    S, H = w1.shape
    N = n_agents
    NH = N * H
    NHp = _round_up(max(NH, 128), 128)
    Hp = _round_up(max(H, 128), 128)
    f32 = jnp.float32

    # Block-diagonal W1 with H-wide per-agent column blocks.
    w1_blk = jnp.kron(jnp.eye(N, dtype=f32), w1.astype(f32))       # (N*S, N*H)
    w1_blk = jnp.pad(w1_blk, ((0, 0), (0, NHp - NH))).astype(compute_dtype)
    b1_blk = jnp.pad(jnp.tile(b1.reshape(1, H).astype(f32), (1, N)),
                     ((0, 0), (0, NHp - NH)))                       # (1, NHp)

    # Sum-pool fused into layer 2: N vertically stacked copies of W2.
    w2_tiled = jnp.pad(jnp.tile(w2.astype(f32), (N, 1)),
                       ((0, NHp - NH), (0, Hp - H))).astype(compute_dtype)
    b2_pad = jnp.pad(b2.reshape(1, H).astype(f32), ((0, 0), (0, Hp - H)))

    wv_row = jnp.pad(wv.reshape(1, H).astype(f32), ((0, 0), (0, Hp - H)))
    bvp = jnp.asarray(bv, f32).reshape(1, 1)
    return (w1_blk, b1_blk, w2_tiled, b2_pad, wv_row, bvp)


def deepset_forward(x, packed_params, *, tile_b=2048):
    """DeepSet forward.  x: [B, N, S] (ideally already in the packed compute
    dtype, e.g. bf16, so no extra cast pass over x); packed_params from
    pack_deepset_params()."""
    w1_blk, b1_blk, w2_tiled, b2_pad, wv_row, bvp = packed_params
    B, N, S = x.shape
    NS, NHp = w1_blk.shape
    Hp = w2_tiled.shape[1]
    assert NS == N * S, "packed params built for a different n_agents/sa_dim"
    compute_dtype = w1_blk.dtype

    # ---- batch tile selection (no wrapper-side padding of x) ----
    tile_b = _round_up(max(128, int(tile_b)), 128)
    tile_b = min(tile_b, _round_up(B, 128))
    if B >= 256:
        # Keep >= 2 grid steps so v7x's second TensorCore has work.
        tile_b = min(tile_b, _round_up(-(-B // 2), 128))
    num_tiles = pl.cdiv(B, tile_b)

    # Flatten agents onto lanes (free, contiguous reshape).  Cast is a no-op
    # when x already arrives in the compute dtype.
    x2 = x.reshape(B, NS)
    if x2.dtype != compute_dtype:
        x2 = x2.astype(compute_dtype)

    # VMEM budget (v7x: 64 MiB physical / 32 MiB scoped default): double-
    # buffered x tiles + f32 h1/h2 intermediates + double-buffered weights +
    # lane-dense out blocks, with 2x headroom.
    itemsize = jnp.dtype(compute_dtype).itemsize
    vmem_est = (2 * tile_b * NS * itemsize            # x (double-buffered)
                + tile_b * (NHp + Hp) * 4             # h1 + h2 (f32)
                + 2 * (NS * NHp + NHp * Hp) * itemsize  # weights (dbl-buffered)
                + 2 * tile_b * 4)                     # out (double-buffered)
    vmem_limit = int(min(48 * 1024 * 1024, max(32 * 1024 * 1024, 2 * vmem_est)))

    # NOTE: for much larger n_agents, consider single-buffering the constant
    # weight specs (pipeline_mode=pl.Buffered(1)); at small N it is negligible.
    out = pl.pallas_call(
        deepset_kernel,
        out_shape=jax.ShapeDtypeStruct((1, B), jnp.float32),
        grid=(num_tiles,),
        in_specs=[
            pl.BlockSpec((tile_b, NS), lambda i: (i, 0)),   # x: streamed
            pl.BlockSpec((NS, NHp), lambda i: (0, 0)),      # weights: constant
            pl.BlockSpec((1, NHp), lambda i: (0, 0)),       #   index maps ->
            pl.BlockSpec((NHp, Hp), lambda i: (0, 0)),      #   VMEM-resident
            pl.BlockSpec((1, Hp), lambda i: (0, 0)),
            pl.BlockSpec((1, Hp), lambda i: (0, 0)),
            pl.BlockSpec((1, 1), lambda i: (0, 0)),
        ],
        out_specs=pl.BlockSpec((1, tile_b), lambda i: (0, i)),  # lane-dense
        compiler_params=pltpu.CompilerParams(
            dimension_semantics=("parallel",),
            vmem_limit_bytes=vmem_limit),
    )(x2, w1_blk, b1_blk, w2_tiled, b2_pad, wv_row, bvp)

    return out.reshape(B, 1)


def init_deepset_params(key, sa_dim, hidden_size):
    """torch.nn.Linear-style init (uniform +-1/sqrt(fan_in)); V head scaled 0.1."""
    k1, k2, k3, k4, k5, k6 = jax.random.split(key, 6)

    def lin(kw, kb, fan_in, fan_out):
        bound = 1.0 / math.sqrt(fan_in)
        w = jax.random.uniform(kw, (fan_in, fan_out), jnp.float32, -bound, bound)
        b = jax.random.uniform(kb, (1, fan_out), jnp.float32, -bound, bound)
        return w, b

    w1, b1 = lin(k1, k2, sa_dim, hidden_size)
    w2, b2 = lin(k3, k4, hidden_size, hidden_size)
    wv, bv = lin(k5, k6, hidden_size, 1)
    return w1, b1, w2, b2, wv * 0.1, bv * 0.1


def deepset_reference(x, w1, b1, w2, b2, wv, bv):
    """Pure-JAX reference of the same forward pass."""
    h1 = jax.nn.relu(jnp.einsum("bns,sh->bnh", x, w1) + b1)
    h1_summed = jnp.sum(h1, axis=1)
    h2 = jax.nn.relu(h1_summed @ w2 + b2)
    return h2 @ wv + bv


if __name__ == "__main__":
    # TODO(synk): use_agent_id=True branch (agent-id attribute concat) not
    # implemented; module default is use_agent_id=False.
    key = jax.random.PRNGKey(0)
    kx, kp, kx2 = jax.random.split(key, 3)

    # Small demo shapes matching the module defaults.
    batch, n_agents, sa_dim, hidden = 2, 4, 16, 32
    x = jax.random.normal(kx, (batch, n_agents, sa_dim), jnp.float32)
    raw = init_deepset_params(kp, sa_dim, hidden)

    # f32 compute path: exact vs. reference.
    params_f32 = pack_deepset_params(*raw, n_agents=n_agents,
                                     compute_dtype=jnp.float32)
    out = jax.block_until_ready(deepset_forward(x, params_f32))
    ref = deepset_reference(x, *raw)
    assert out.shape == (batch, 1)
    assert jnp.allclose(out, ref, atol=1e-4, rtol=1e-4)

    # Multi-tile path with a partial edge block (exercises no-pad grid + mask).
    b_big = 300
    x_big = jax.random.normal(kx2, (b_big, n_agents, sa_dim), jnp.float32)
    out_big = jax.block_until_ready(
        deepset_forward(x_big, params_f32, tile_b=128))
    ref_big = deepset_reference(x_big, *raw)
    assert out_big.shape == (b_big, 1)
    assert jnp.allclose(out_big, ref_big, atol=1e-4, rtol=1e-4)

    # bf16 compute path (default packing): x arrives already in bf16 so no
    # wrapper-side cast pass; mixed-precision tolerance vs. f32 reference.
    params_bf16 = pack_deepset_params(*raw, n_agents=n_agents)  # bf16 default
    x_big_bf16 = x_big.astype(jnp.bfloat16)
    out_bf16 = jax.block_until_ready(deepset_forward(x_big_bf16, params_bf16))
    ref_bf16 = deepset_reference(x_big_bf16.astype(jnp.float32), *raw)
    assert out_bf16.shape == (b_big, 1)
    assert jnp.allclose(out_bf16, ref_bf16, atol=5e-2, rtol=5e-2)

    print("KERNEL_OK")
</pallas_src>

<mosaic_0001>
module attributes {stable_mosaic.version = 11 : i64} {
  func.func @deepset_kernel(%arg0: i32, %arg1: memref<128x64xf32, #tpu.memory_space<vmem>>, %arg2: memref<64x128xf32, #tpu.memory_space<vmem>>, %arg3: memref<1x128xf32, #tpu.memory_space<vmem>>, %arg4: memref<128x128xf32, #tpu.memory_space<vmem>>, %arg5: memref<1x128xf32, #tpu.memory_space<vmem>>, %arg6: memref<1x128xf32, #tpu.memory_space<vmem>>, %arg7: memref<1x1xf32, #tpu.memory_space<vmem>>, %arg8: memref<1x128xf32, #tpu.memory_space<vmem>>) attributes {dimension_semantics = [#tpu.dimension_semantics<parallel>], iteration_bounds = array<i64: 1>, scalar_prefetch = 0 : i64, scratch_operands = 0 : i64, tpu.core_type = #tpu.core_type<tc>, window_params = [{transform_indices = @transform_0, window_bounds = array<i64: 128, 64>}, {pipeline_mode = #tpu.pipeline_mode<synchronous>, transform_indices = @transform_1, window_bounds = array<i64: 64, 128>}, {pipeline_mode = #tpu.pipeline_mode<synchronous>, transform_indices = @transform_2, window_bounds = array<i64: 1, 128>}, {pipeline_mode = #tpu.pipeline_mode<synchronous>, transform_indices = @transform_3, window_bounds = array<i64: 128, 128>}, {pipeline_mode = #tpu.pipeline_mode<synchronous>, transform_indices = @transform_4, window_bounds = array<i64: 1, 128>}, {pipeline_mode = #tpu.pipeline_mode<synchronous>, transform_indices = @transform_5, window_bounds = array<i64: 1, 128>}, {pipeline_mode = #tpu.pipeline_mode<synchronous>, transform_indices = @transform_6, window_bounds = array<i64: 1, 1>}, {transform_indices = @transform_7, window_bounds = array<i64: 1, 128>}]} {
    %c0 = arith.constant 0 : index
    %c0_0 = arith.constant 0 : index
    %0 = vector.load %arg1[%c0, %c0_0] : memref<128x64xf32, #tpu.memory_space<vmem>>, vector<128x64xf32>
    %c0_1 = arith.constant 0 : index
    %c0_2 = arith.constant 0 : index
    %1 = vector.load %arg2[%c0_1, %c0_2] : memref<64x128xf32, #tpu.memory_space<vmem>>, vector<64x128xf32>
    %cst = arith.constant dense<0.000000e+00> : vector<128x128xf32>
    %2 = tpu.matmul %0, %1, %cst {dimension_numbers = #tpu.dot_dimension_numbers<[1], [0], [0], [1], [0, 0, 1, 1], [], []>} : vector<128x64xf32>, vector<64x128xf32>, vector<128x128xf32> -> vector<128x128xf32>
    %c0_3 = arith.constant 0 : index
    %c0_4 = arith.constant 0 : index
    %3 = vector.load %arg3[%c0_3, %c0_4] : memref<1x128xf32, #tpu.memory_space<vmem>>, vector<1x128xf32>
    %4 = vector.broadcast %3 : vector<1x128xf32> to vector<128x128xf32>
    %5 = arith.addf %2, %4 : vector<128x128xf32>
    %cst_5 = arith.constant 0.000000e+00 : f32
    %6 = vector.broadcast %cst_5 : f32 to vector<128x128xf32>
    %7 = arith.maximumf %5, %6 : vector<128x128xf32>
    %c0_6 = arith.constant 0 : index
    %c0_7 = arith.constant 0 : index
    %8 = vector.load %arg4[%c0_6, %c0_7] : memref<128x128xf32, #tpu.memory_space<vmem>>, vector<128x128xf32>
    %cst_8 = arith.constant dense<0.000000e+00> : vector<128x128xf32>
    %9 = tpu.matmul %7, %8, %cst_8 {dimension_numbers = #tpu.dot_dimension_numbers<[1], [0], [0], [1], [0, 0, 1, 1], [], []>} : vector<128x128xf32>, vector<128x128xf32>, vector<128x128xf32> -> vector<128x128xf32>
    %c0_9 = arith.constant 0 : index
    %c0_10 = arith.constant 0 : index
    %10 = vector.load %arg5[%c0_9, %c0_10] : memref<1x128xf32, #tpu.memory_space<vmem>>, vector<1x128xf32>
    %11 = vector.broadcast %10 : vector<1x128xf32> to vector<128x128xf32>
    %12 = arith.addf %9, %11 : vector<128x128xf32>
    %cst_11 = arith.constant 0.000000e+00 : f32
    %13 = vector.broadcast %cst_11 : f32 to vector<128x128xf32>
    %14 = arith.maximumf %12, %13 : vector<128x128xf32>
    %c0_12 = arith.constant 0 : index
    %c0_13 = arith.constant 0 : index
    %15 = vector.load %arg6[%c0_12, %c0_13] : memref<1x128xf32, #tpu.memory_space<vmem>>, vector<1x128xf32>
    %cst_14 = arith.constant dense<0.000000e+00> : vector<1x128xf32>
    %16 = tpu.matmul %15, %14, %cst_14 {dimension_numbers = #tpu.dot_dimension_numbers<[1], [1], [0], [0], [0, 0, 1, 0], [], []>} : vector<1x128xf32>, vector<128x128xf32>, vector<1x128xf32> -> vector<1x128xf32>
    %c0_15 = arith.constant 0 : index
    %c0_16 = arith.constant 0 : index
    %17 = vector.load %arg7[%c0_15, %c0_16] : memref<1x1xf32, #tpu.memory_space<vmem>>, vector<1x1xf32>
    %18 = vector.broadcast %17 : vector<1x1xf32> to vector<1x128xf32>
    %19 = arith.addf %16, %18 : vector<1x128xf32>
    %c0_17 = arith.constant 0 : index
    %c0_18 = arith.constant 0 : index
    %20 = vector.load %arg8[%c0_17, %c0_18] : memref<1x128xf32, #tpu.memory_space<vmem>>, vector<1x128xf32>
    tpu.vector_store %arg8[%c0_17, %c0_18], %19 {strides = array<i32>} : memref<1x128xf32, #tpu.memory_space<vmem>>, vector<1x128xf32>,
    return
  }
  func.func @transform_0(%arg0: i32) -> (i32, i32) {
    %c0_i32 = arith.constant 0 : i32
    %c0_i32_0 = arith.constant 0 : i32
    return %arg0, %c0_i32 : i32, i32
  }
  func.func @transform_1(%arg0: i32) -> (i32, i32) {
    %c0_i32 = arith.constant 0 : i32
    %c0_i32_0 = arith.constant 0 : i32
    %c0_i32_1 = arith.constant 0 : i32
    return %c0_i32, %c0_i32_0 : i32, i32
  }
  func.func @transform_2(%arg0: i32) -> (i32, i32) {
    %c0_i32 = arith.constant 0 : i32
    %c0_i32_0 = arith.constant 0 : i32
    %c0_i32_1 = arith.constant 0 : i32
    return %c0_i32, %c0_i32_0 : i32, i32
  }
  func.func @transform_3(%arg0: i32) -> (i32, i32) {
    %c0_i32 = arith.constant 0 : i32
    %c0_i32_0 = arith.constant 0 : i32
    %c0_i32_1 = arith.constant 0 : i32
    return %c0_i32, %c0_i32_0 : i32, i32
  }
  func.func @transform_4(%arg0: i32) -> (i32, i32) {
    %c0_i32 = arith.constant 0 : i32
    %c0_i32_0 = arith.constant 0 : i32
    %c0_i32_1 = arith.constant 0 : i32
    return %c0_i32, %c0_i32_0 : i32, i32
  }
  func.func @transform_5(%arg0: i32) -> (i32, i32) {
    %c0_i32 = arith.constant 0 : i32
    %c0_i32_0 = arith.constant 0 : i32
    %c0_i32_1 = arith.constant 0 : i32
    return %c0_i32, %c0_i32_0 : i32, i32
  }
  func.func @transform_6(%arg0: i32) -> (i32, i32) {
    %c0_i32 = arith.constant 0 : i32
    %c0_i32_0 = arith.constant 0 : i32
    %c0_i32_1 = arith.constant 0 : i32
    return %c0_i32, %c0_i32_0 : i32, i32
  }
  func.func @transform_7(%arg0: i32) -> (i32, i32) {
    %c0_i32 = arith.constant 0 : i32
    %c0_i32_0 = arith.constant 0 : i32
    return %c0_i32, %arg0 : i32, i32
  }
}

</mosaic_0001>

<bundles_post_ra>
// kernel: tpu_custom_call.1
= control target key start
LH: loop header
LB: loop body
LE: loop exit
PB: predicated region body
PF: predicated region fallthrough
CT: control target
= control target key end

     0   :  { %s1036_s0 = inlined_call_operand.vmem [shape: f32[2,64], index: 0, kind: input, shape index: {}]   ;;  %s1037_s1 = inlined_call_operand.hbm [shape: f32[64,128], index: 1, kind: input, shape index: {}]   ;;  %s1038_s2 = inlined_call_operand.vmem [shape: f32[1,128], index: 2, kind: input, shape index: {}]   ;;  %s1039_s3 = inlined_call_operand.hbm [shape: f32[128,128], index: 3, kind: input, shape index: {}]   ;;  %s1040_s4 = inlined_call_operand.vmem [shape: f32[1,128], index: 4, kind: input, shape index: {}]   ;;  %s1041_s5 = inlined_call_operand.vmem [shape: f32[1,128], index: 5, kind: input, shape index: {}]   ;;  %s1042_s6 = inlined_call_operand.<no memory space> [shape: f32[1,1], index: 6, kind: input, shape index: {}]   ;;  %s1043_s7 = inlined_call_operand.hbm [shape: f32[1,2], index: 7, kind: output, shape index: {}]  }
   0x1   :  { %v12_v0 = vstv %s1042_s6 }
   0x2   :  { %13 = vst [vmem:[#allocation2] sm:$0x1] %v12_v0 }
   0x3   :  { %14 = vsyncpa [#allocation4], 0 }
   0x4   :  { %15 = vsyncpa [#allocation7], 0 }
   0x5   :  { %16 = vsyncpa [#allocation5], 0  ;;  %s877_s26 = smov [#allocation3]  }
   0x6   :  { %s24_s27 = sshll.u32 %s877_s26, 4  ;;  %s25_s27 = int_to_ptr.vmem [resolvable:$true] %s24_s27 }
   0x7   :  { %s819_s28 = scalar_lea.vmem %s25_s27, 1024  ;;  %p824_p1 = scmp.lt.s32.totalorder %s25_s27, %s25_s27 }
   0x8   :  { %p820_p0 = scmp.ne.s32.totalorder %s25_s27, %s819_s28  ;;  %p825_p2 = scmp.lt.s32.totalorder %s819_s28, %s819_s28 }
   0xa   :  { %p826_p3 = por %p825_p2, %p824_p1 }
   0xc   :  { %p827_p4 = pnand %p826_p3, %p820_p0 }
   0xe   :  { %830 = shalt.err (!%p827_p4)
}
   0xf   :  { %s878_s29 = smov 128   ;;  %s879_s30 = smov 8  }
  0x10   :  { %30 = dma.hbm_to_vmem [thread:$0]  %s1037_s1, 1024, %s25_s27, [#allocation4], %s878_s29, %s878_s29, %s879_s30  }
  0x11   :  { %s880_s6 = smov [#allocation6]  }
  0x12   :  { %s38_s10 = sshll.u32 %s880_s6, 4  ;;  %s39_s10 = int_to_ptr.vmem [resolvable:$true] %s38_s10 }
  0x13   :  { %s839_s11 = scalar_lea.vmem %s39_s10, 2048  ;;  %p844_p6 = scmp.lt.s32.totalorder %s39_s10, %s39_s10 }
  0x14   :  { %p840_p5 = scmp.ne.s32.totalorder %s39_s10, %s839_s11  ;;  %p845_p7 = scmp.lt.s32.totalorder %s839_s11, %s839_s11 }
  0x16   :  { %p846_p8 = por %p845_p7, %p844_p6 }
  0x18   :  { %p847_p9 = pnand %p846_p8, %p840_p5 }
  0x1a   :  { %850 = shalt.err (!%p847_p9)
}
  0x1b   :  { %44 = dma.hbm_to_vmem [thread:$0]  %s1039_s3, 2048, %s39_s10, [#allocation7], %s878_s29, %s878_s29, %s879_s30  }
  0x1c   :  { %871 = dma.done.wait [#allocation4], 1024  }
  0x1d   :  { %872 = vsyncadd [#allocation4], 4294966272 }
  0x1e   :  { %873 = dma.done.wait [#allocation7], 2048  }
  0x1f   :  { %874 = vsyncadd [#allocation7], 4294965248  ;;  %v80_v1 = vld [vmem:[#allocation3 + $0x38] sm:$0xff]  ;;  %v79_v2 = vld [vmem:[#allocation3 + $0x30] sm:$0xff]  ;;  %vm88_vm0 = vcmask 523264   ;;  %vm882_vm1 = vmmov 0  }
  0x20   :  { %671 = vmatprep.subr.mxu1 %v80_v1  ;;  %v78_v3 = vld [vmem:[#allocation3 + $0x28] sm:$0xff]  ;;  %v57_v4 = vld [vmem:[%s1036_s0] sm:$0xff]  ;;  %v75_v7 = vld [vmem:[#allocation3 + $0x10] sm:$0xff]  ;;  %s884_s21 = smov [#allocation8]  }
  0x21   :  { %672 = vmatpush3.msra.mxu1 %v80_v1  ;;  %687 = vmatprep.mubr.msk.f32.mxu1 %vm88_vm0, %v57_v4  ;;  %v77_v5 = vld [vmem:[#allocation3 + $0x20] sm:$0xff]  ;;  %v76_v6 = vld [vmem:[#allocation3 + $0x18] sm:$0xff]  ;;  %v74_v8 = vld [vmem:[#allocation3 + $0x8] sm:$0xff]  ;;  %s570_s22 = sshll.u32 %s884_s21, 4  ;;  %s571_s22 = int_to_ptr.vmem [resolvable:$true] %s570_s22 }
  0x22   :  { %673 = vmatprep.subr.mxu1 %v79_v2  ;;  %v73_v9 = vld [vmem:[#allocation3] sm:$0xff]  ;;  %v313_v11 = vld [vmem:[#allocation6 + $0x78] sm:$0xff]  ;;  %v59_v12 = vld [vmem:[%s1036_s0 + $0x10] sm:$0xff]  ;;  %s851_s23 = scalar_lea.vmem %s571_s22, 16  ;;  %s855_s24 = scalar_lea.vmem %s571_s22, 32 }
  0x23   :  { %674 = vmatpush3.msra.mxu1 %v79_v2  ;;  %v58_v10 = vld [vmem:[%s1036_s0 + $0x8] sm:$0xff]  ;;  %v312_v13 = vld [vmem:[#allocation6 + $0x70] sm:$0xff]  ;;  %v61_v16 = vld [vmem:[%s1036_s0 + $0x20] sm:$0xff]  ;;  %p852_p10 = scmp.ne.s32.totalorder %s571_s22, %s851_s23  ;;  %p856_p11 = scmp.lt.s32.totalorder %s571_s22, %s571_s22 }
  0x24   :  { %675 = vmatprep.subr.mxu1 %v78_v3  ;;  %v60_v14 = vld [vmem:[%s1036_s0 + $0x18] sm:$0xff]  ;;  %v311_v15 = vld [vmem:[#allocation6 + $0x68] sm:$0xff]  ;;  %v310_v17 = vld [vmem:[#allocation6 + $0x60] sm:$0xff]  ;;  %p857_p12 = scmp.lt.s32.totalorder %s855_s24, %s851_s23 }
  0x25   :  { %676 = vmatpush3.msra.mxu1 %v78_v3  ;;  %v62_v18 = vld [vmem:[%s1036_s0 + $0x28] sm:$0xff]  ;;  %v309_v19 = vld [vmem:[#allocation6 + $0x58] sm:$0xff]  ;;  %v63_v20 = vld [vmem:[%s1036_s0 + $0x30] sm:$0xff] }
  0x26   :  { %677 = vmatprep.subr.mxu1 %v77_v5  ;;  %v308_v21 = vld [vmem:[#allocation6 + $0x50] sm:$0xff]  ;;  %v307_v23 = vld [vmem:[#allocation6 + $0x48] sm:$0xff]  ;;  %v65_v24 = vld [vmem:[%s1036_s0 + $0x40] sm:$0xff]  ;;  %p858_p13 = por %p857_p12, %p856_p11 }
  0x27   :  { %678 = vmatpush3.msra.mxu1 %v77_v5  ;;  %v64_v22 = vld [vmem:[%s1036_s0 + $0x38] sm:$0xff]  ;;  %v306_v25 = vld [vmem:[#allocation6 + $0x40] sm:$0xff]  ;;  %v67_v28 = vld [vmem:[%s1036_s0 + $0x50] sm:$0xff] }
  0x28   :  { %679 = vmatprep.subr.mxu1 %v76_v6  ;;  %v66_v26 = vld [vmem:[%s1036_s0 + $0x48] sm:$0xff]  ;;  %v305_v27 = vld [vmem:[#allocation6 + $0x38] sm:$0xff]  ;;  %v304_v29 = vld [vmem:[#allocation6 + $0x30] sm:$0xff]  ;;  %p859_p0 = pnand %p858_p13, %p852_p10 }
  0x29   :  { %680 = vmatpush3.msra.mxu1 %v76_v6  ;;  %v68_v30 = vld [vmem:[%s1036_s0 + $0x58] sm:$0xff]  ;;  %v303_v31 = vld [vmem:[#allocation6 + $0x28] sm:$0xff]  ;;  %v69_v32 = vld [vmem:[%s1036_s0 + $0x60] sm:$0xff] }
  0x2a   :  { %681 = vmatprep.subr.mxu1 %v75_v7  ;;  %v302_v33 = vld [vmem:[#allocation6 + $0x20] sm:$0xff]  ;;  %v301_v35 = vld [vmem:[#allocation6 + $0x18] sm:$0xff]  ;;  %v71_v36 = vld [vmem:[%s1036_s0 + $0x70] sm:$0xff] }
  0x2b   :  { %682 = vmatpush3.msra.mxu1 %v75_v7  ;;  %v70_v34 = vld [vmem:[%s1036_s0 + $0x68] sm:$0xff]  ;;  %v72_v37 = vld [vmem:[%s1036_s0 + $0x78] sm:$0xff]  ;;  %v580_v41 = vld [vmem:[%s1038_s2] ss:$0 sm:$0xff] }
  0x2c   :  { %683 = vmatprep.subr.mxu1 %v74_v8  ;;  %v300_v38 = vld [vmem:[#allocation6 + $0x10] sm:$0xff]  ;;  %v299_v39 = vld [vmem:[#allocation6 + $0x8] sm:$0xff]  ;;  %v298_v40 = vld [vmem:[#allocation6] sm:$0xff] }
  0x2d   :  { %684 = vmatpush3.msra.mxu1 %v74_v8 }
  0x2e   :  { %685 = vmatprep.subr.mxu1 %v73_v9 }
  0x2f   :  { %686 = vmatpush3.msra.mxu1 %v73_v9 }
  0x30   :  { %688 = vmatmul.mubr.msk.f32.vlgmr.msra.gmra.mxu1 %vm88_vm0, %v58_v10  ;;  %711 = vmatprep.subr.mxu1 %v313_v11 }
  0x31   :  { %690 = vmatprep.mubr.msk.f32.mxu1 %vm88_vm0, %v59_v12  ;;  %712 = vmatpush3.msra.mxu1 %v313_v11 }
  0x32   :  { %713 = vmatprep.subr.mxu1 %v312_v13 }
  0x33   :  { %714 = vmatpush3.msra.mxu1 %v312_v13 }
  0x34   :  { %691 = vmatmul.mubr.msk.f32.gmra.mxu1 %vm88_vm0, %v60_v14  ;;  %715 = vmatprep.subr.mxu1 %v311_v15 }
  0x35   :  { %693 = vmatprep.mubr.msk.f32.mxu1 %vm88_vm0, %v61_v16  ;;  %716 = vmatpush3.msra.mxu1 %v311_v15 }
  0x36   :  { %717 = vmatprep.subr.mxu1 %v310_v17 }
  0x37   :  { %718 = vmatpush3.msra.mxu1 %v310_v17 }
  0x38   :  { %694 = vmatmul.mubr.msk.f32.gmra.mxu1 %vm88_vm0, %v62_v18  ;;  %719 = vmatprep.subr.mxu1 %v309_v19 }
  0x39   :  { %696 = vmatprep.mubr.msk.f32.mxu1 %vm88_vm0, %v63_v20  ;;  %720 = vmatpush3.msra.mxu1 %v309_v19 }
  0x3a   :  { %721 = vmatprep.subr.mxu1 %v308_v21 }
  0x3b   :  { %722 = vmatpush3.msra.mxu1 %v308_v21 }
  0x3c   :  { %697 = vmatmul.mubr.msk.f32.gmra.mxu1 %vm88_vm0, %v64_v22  ;;  %723 = vmatprep.subr.mxu1 %v307_v23 }
  0x3d   :  { %699 = vmatprep.mubr.msk.f32.mxu1 %vm88_vm0, %v65_v24  ;;  %724 = vmatpush3.msra.mxu1 %v307_v23 }
  0x3e   :  { %725 = vmatprep.subr.mxu1 %v306_v25 }
  0x3f   :  { %726 = vmatpush3.msra.mxu1 %v306_v25 }
  0x40   :  { %700 = vmatmul.mubr.msk.f32.gmra.mxu1 %vm88_vm0, %v66_v26  ;;  %727 = vmatprep.subr.mxu1 %v305_v27  ;;  %v881_v26 = vmov 0.0  }
  0x41   :  { %702 = vmatprep.mubr.msk.f32.mxu1 %vm88_vm0, %v67_v28  ;;  %728 = vmatpush3.msra.mxu1 %v305_v27  ;;  %v483_v27 = vld [vmem:[#allocation2] sm:$0x1]  ;;  %v883_v28 = vmov 0  }
  0x42   :  { %729 = vmatprep.subr.mxu1 %v304_v29  ;;  %767 = vmatprep.subr.mxu0 %v881_v26 }
  0x43   :  { %730 = vmatpush3.msra.mxu1 %v304_v29  ;;  %799 = vmatprep.mubr.msk.f32.mxu0 %vm882_vm1, %v881_v26 }
  0x44   :  { %703 = vmatmul.mubr.msk.f32.gmra.mxu1 %vm88_vm0, %v68_v30  ;;  %731 = vmatprep.subr.mxu1 %v303_v31 }
  0x45   :  { %705 = vmatprep.mubr.msk.f32.mxu1 %vm88_vm0, %v69_v32  ;;  %732 = vmatpush3.msra.mxu1 %v303_v31 }
  0x46   :  { %733 = vmatprep.subr.mxu1 %v302_v33  ;;  %810 = vset.pattern.permute.xlu0 %v883_v28 }
  0x47   :  { %734 = vmatpush3.msra.mxu1 %v302_v33  ;;  %486 = vperm.xlu0 %810, %v483_v27  }
  0x48   :  { %706 = vmatmul.mubr.msk.f32.gmra.mxu1 %vm88_vm0, %v70_v34  ;;  %735 = vmatprep.subr.mxu1 %v301_v35 }
  0x49   :  { %708 = vmatprep.mubr.msk.f32.mxu1 %vm88_vm0, %v71_v36  ;;  %736 = vmatpush3.msra.mxu1 %v301_v35 }
  0x4a   :  { %737 = vmatprep.subr.mxu1 %v300_v38 }
  0x4b   :  { %738 = vmatpush3.msra.mxu1 %v300_v38 }
  0x4c   :  { %709 = vmatmul.mubr.msk.f32.gmra.mxu1 %vm88_vm0, %v72_v37  ;;  %739 = vmatprep.subr.mxu1 %v299_v39 }
  0x4d   :  { %740 = vmatpush3.msra.mxu1 %v299_v39 }
  0x4e   :  { %741 = vmatprep.subr.mxu1 %v298_v40 }
  0x4f   :  { %742 = vmatpush3.msra.mxu1 %v298_v40 }
  0xf0   :  { %v689_v42 = vpop.f32.mrf.mxu1 }
  0xf1   :  { %v209_v43 = vadd.f32 %v689_v42, %v580_v41 }
  0xf2   :  { %v203_v44 = vpop.f32.mrf.mxu1 }
  0xf3   :  { %v204_v45 = vadd.f32 %v580_v41, %v203_v44  ;;  %v283_v48 = vmax.f32 %v209_v43, 0.0  ;;  %v597_v43 = vld [vmem:[%s1040_s4] ss:$0 sm:$0xff] }
  0xf4   :  { %v692_v46 = vpop.f32.mrf.mxu1 }
  0xf5   :  { %v282_v47 = vmax.f32 %v204_v45, 0.0  ;;  %v219_v49 = vadd.f32 %v692_v46, %v580_v41 }
  0xf6   :  { %v213_v50 = vpop.f32.mrf.mxu1 }
  0xf7   :  { %v214_v51 = vadd.f32 %v580_v41, %v213_v50  ;;  %743 = vmatprep.mubr.f32.mxu1 %v282_v47  ;;  %v285_v54 = vmax.f32 %v219_v49, 0.0 }
  0xf8   :  { %v695_v52 = vpop.f32.mrf.mxu1  ;;  %744 = vmatmul.mubr.f32.vlgmr.msra.gmra.mxu1 %v283_v48 }
  0xf9   :  { %v284_v53 = vmax.f32 %v214_v51, 0.0  ;;  %v229_v55 = vadd.f32 %v695_v52, %v580_v41 }
  0xfa   :  { %v223_v56 = vpop.f32.mrf.mxu1 }
  0xfb   :  { %v224_v57 = vadd.f32 %v580_v41, %v223_v56  ;;  %746 = vmatprep.mubr.f32.mxu1 %v284_v53  ;;  %v287_v60 = vmax.f32 %v229_v55, 0.0 }
  0xfc   :  { %v698_v58 = vpop.f32.mrf.mxu1  ;;  %747 = vmatmul.mubr.f32.gmra.mxu1 %v285_v54 }
  0xfd   :  { %v286_v59 = vmax.f32 %v224_v57, 0.0  ;;  %v239_v61 = vadd.f32 %v698_v58, %v580_v41 }
  0xfe   :  { %v233_v62 = vpop.f32.mrf.mxu1 }
  0xff   :  { %v234_v63 = vadd.f32 %v580_v41, %v233_v62  ;;  %749 = vmatprep.mubr.f32.mxu1 %v286_v59  ;;  %v289_v2 = vmax.f32 %v239_v61, 0.0 }
 0x100   :  { %v701_v0 = vpop.f32.mrf.mxu1  ;;  %750 = vmatmul.mubr.f32.gmra.mxu1 %v287_v60 }
 0x101   :  { %v288_v1 = vmax.f32 %v234_v63, 0.0  ;;  %v249_v3 = vadd.f32 %v701_v0, %v580_v41 }
 0x102   :  { %v243_v4 = vpop.f32.mrf.mxu1 }
 0x103   :  { %v244_v5 = vadd.f32 %v580_v41, %v243_v4  ;;  %752 = vmatprep.mubr.f32.mxu1 %v288_v1  ;;  %v291_v8 = vmax.f32 %v249_v3, 0.0 }
 0x104   :  { %v704_v6 = vpop.f32.mrf.mxu1  ;;  %753 = vmatmul.mubr.f32.gmra.mxu1 %v289_v2 }
 0x105   :  { %v290_v7 = vmax.f32 %v244_v5, 0.0  ;;  %v259_v9 = vadd.f32 %v704_v6, %v580_v41 }
 0x106   :  { %v253_v10 = vpop.f32.mrf.mxu1 }
 0x107   :  { %v254_v11 = vadd.f32 %v580_v41, %v253_v10  ;;  %755 = vmatprep.mubr.f32.mxu1 %v290_v7  ;;  %v293_v14 = vmax.f32 %v259_v9, 0.0 }
 0x108   :  { %v707_v12 = vpop.f32.mrf.mxu1  ;;  %756 = vmatmul.mubr.f32.gmra.mxu1 %v291_v8 }
 0x109   :  { %v292_v13 = vmax.f32 %v254_v11, 0.0  ;;  %v269_v15 = vadd.f32 %v707_v12, %v580_v41 }
 0x10a   :  { %v263_v16 = vpop.f32.mrf.mxu1 }
 0x10b   :  { %v264_v17 = vadd.f32 %v580_v41, %v263_v16  ;;  %758 = vmatprep.mubr.f32.mxu1 %v292_v13  ;;  %v295_v20 = vmax.f32 %v269_v15, 0.0  ;;  %v489_v15 = vlaneseq }
 0x10c   :  { %v710_v18 = vpop.f32.mrf.mxu1  ;;  %759 = vmatmul.mubr.f32.gmra.mxu1 %v293_v14  ;;  %v482_v14 = vld [vmem:[%s1041_s5] sm:$0x1] }
 0x10d   :  { %v294_v19 = vmax.f32 %v264_v17, 0.0  ;;  %v279_v21 = vadd.f32 %v710_v18, %v580_v41  ;;  %v490_v16 = vshrl.u32 %v489_v15, 7  ;;  %v487_v18 = vpop.permute.xlu0 %486 }
 0x10e   :  { %v273_v22 = vpop.f32.mrf.mxu1 }
 0x10f   :  { %v274_v23 = vadd.f32 %v580_v41, %v273_v22  ;;  %761 = vmatprep.mubr.f32.mxu1 %v294_v19  ;;  %v297_v25 = vmax.f32 %v279_v21, 0.0  ;;  %v491_v17 = vsub.s32 0, %v490_v16 }
 0x110   :  { %762 = vmatmul.mubr.f32.gmra.mxu1 %v295_v20 }
 0x111   :  { %v296_v24 = vmax.f32 %v274_v23, 0.0  ;;  %v492_v19 = vrot.slane %v487_v18, %v491_v17 }
 0x113   :  { %764 = vmatprep.mubr.f32.mxu1 %v296_v24 }
 0x114   :  { %765 = vmatmul.mubr.f32.gmra.mxu1 %v297_v25 }
 0x1b8   :  { %v1003_v29 = vpop.f32.mrf.mxu1 }
 0x1b9   :  { %v393_v9 = vadd.f32 %v1003_v29, %v597_v43 }
 0x1ba   :  { %v1005_v30 = vpop.f32.mrf.mxu1 }
 0x1bb   :  { %v467_v11 = vmax.f32 %v393_v9, 0.0  ;;  %v388_v12 = vadd.f32 %v597_v43, %v1005_v30 }
 0x1bc   :  { %v748_v31 = vpop.f32.mrf.mxu1 }
 0x1bd   :  { %v403_v5 = vadd.f32 %v748_v31, %v597_v43  ;;  %v466_v13 = vmax.f32 %v388_v12, 0.0 }
 0x1be   :  { %v1007_v32 = vpop.f32.mrf.mxu1 }
 0x1bf   :  { %v469_v7 = vmax.f32 %v403_v5, 0.0  ;;  %v398_v8 = vadd.f32 %v597_v43, %v1007_v32 }
 0x1c0   :  { %v751_v33 = vpop.f32.mrf.mxu1 }
 0x1c1   :  { %v413_v1 = vadd.f32 %v751_v33, %v597_v43  ;;  %v468_v10 = vmax.f32 %v398_v8, 0.0 }
 0x1c2   :  { %v407_v34 = vpop.f32.mrf.mxu1 }
 0x1c3   :  { %v471_v3 = vmax.f32 %v413_v1, 0.0  ;;  %v408_v4 = vadd.f32 %v597_v43, %v407_v34 }
 0x1c4   :  { %v754_v35 = vpop.f32.mrf.mxu1 }
 0x1c5   :  { %v423_v61 = vadd.f32 %v754_v35, %v597_v43  ;;  %v470_v6 = vmax.f32 %v408_v4, 0.0 }
 0x1c6   :  { %v417_v36 = vpop.f32.mrf.mxu1 }
 0x1c7   :  { %v473_v63 = vmax.f32 %v423_v61, 0.0  ;;  %v418_v0 = vadd.f32 %v597_v43, %v417_v36 }
 0x1c8   :  { %v757_v37 = vpop.f32.mrf.mxu1 }
 0x1c9   :  { %v433_v57 = vadd.f32 %v757_v37, %v597_v43  ;;  %v472_v2 = vmax.f32 %v418_v0, 0.0 }
 0x1ca   :  { %v427_v38 = vpop.f32.mrf.mxu1 }
 0x1cb   :  { %v475_v59 = vmax.f32 %v433_v57, 0.0  ;;  %v428_v60 = vadd.f32 %v597_v43, %v427_v38 }
 0x1cc   :  { %v760_v39 = vpop.f32.mrf.mxu1 }
 0x1cd   :  { %v443_v53 = vadd.f32 %v760_v39, %v597_v43  ;;  %v474_v62 = vmax.f32 %v428_v60, 0.0 }
 0x1ce   :  { %v437_v40 = vpop.f32.mrf.mxu1 }
 0x1cf   :  { %v477_v55 = vmax.f32 %v443_v53, 0.0  ;;  %v438_v56 = vadd.f32 %v597_v43, %v437_v40 }
 0x1d0   :  { %v763_v41 = vpop.f32.mrf.mxu1 }
 0x1d1   :  { %v453_v49 = vadd.f32 %v763_v41, %v597_v43  ;;  %v476_v58 = vmax.f32 %v438_v56, 0.0 }
 0x1d2   :  { %v447_v42 = vpop.f32.mrf.mxu1 }
 0x1d3   :  { %v479_v51 = vmax.f32 %v453_v49, 0.0  ;;  %v448_v52 = vadd.f32 %v597_v43, %v447_v42 }
 0x1d4   :  { %v766_v44 = vpop.f32.mrf.mxu1 }
 0x1d5   :  { %v463_v45 = vadd.f32 %v766_v44, %v597_v43  ;;  %v478_v54 = vmax.f32 %v448_v52, 0.0 }
 0x1d6   :  { %v457_v46 = vpop.f32.mrf.mxu1 }
 0x1d7   :  { %v481_v47 = vmax.f32 %v463_v45, 0.0  ;;  %v458_v48 = vadd.f32 %v597_v43, %v457_v46 }
 0x1d9   :  { %768 = vmatpush3.xpose.msra.mxu0 %v481_v47  ;;  %v480_v50 = vmax.f32 %v458_v48, 0.0 }
 0x1da   :  { %769 = vmatprep.subr.mxu0 %v881_v26 }
 0x1dd   :  { %770 = vmatpush3.xpose.msra.mxu0 %v480_v50 }
 0x1de   :  { %771 = vmatprep.subr.mxu0 %v881_v26 }
 0x1e1   :  { %772 = vmatpush3.xpose.msra.mxu0 %v479_v51 }
 0x1e2   :  { %773 = vmatprep.subr.mxu0 %v881_v26 }
 0x1e5   :  { %774 = vmatpush3.xpose.msra.mxu0 %v478_v54 }
 0x1e6   :  { %775 = vmatprep.subr.mxu0 %v881_v26 }
 0x1e9   :  { %776 = vmatpush3.xpose.msra.mxu0 %v477_v55 }
 0x1ea   :  { %777 = vmatprep.subr.mxu0 %v881_v26 }
 0x1ed   :  { %778 = vmatpush3.xpose.msra.mxu0 %v476_v58 }
 0x1ee   :  { %779 = vmatprep.subr.mxu0 %v881_v26 }
 0x1f1   :  { %780 = vmatpush3.xpose.msra.mxu0 %v475_v59 }
 0x1f2   :  { %781 = vmatprep.subr.mxu0 %v881_v26 }
 0x1f5   :  { %782 = vmatpush3.xpose.msra.mxu0 %v474_v62 }
 0x1f6   :  { %783 = vmatprep.subr.mxu0 %v881_v26 }
 0x1f9   :  { %784 = vmatpush3.xpose.msra.mxu0 %v473_v63 }
 0x1fa   :  { %785 = vmatprep.subr.mxu0 %v881_v26 }
 0x1fd   :  { %786 = vmatpush3.xpose.msra.mxu0 %v472_v2 }
 0x1fe   :  { %787 = vmatprep.subr.mxu0 %v881_v26 }
 0x201   :  { %788 = vmatpush3.xpose.msra.mxu0 %v471_v3 }
 0x202   :  { %789 = vmatprep.subr.mxu0 %v881_v26 }
 0x205   :  { %790 = vmatpush3.xpose.msra.mxu0 %v470_v6 }
 0x206   :  { %791 = vmatprep.subr.mxu0 %v881_v26 }
 0x209   :  { %792 = vmatpush3.xpose.msra.mxu0 %v469_v7 }
 0x20a   :  { %793 = vmatprep.subr.mxu0 %v881_v26 }
 0x20d   :  { %794 = vmatpush3.xpose.msra.mxu0 %v468_v10 }
 0x20e   :  { %795 = vmatprep.subr.mxu0 %v881_v26 }
 0x211   :  { %796 = vmatpush3.xpose.msra.mxu0 %v467_v11 }
 0x212   :  { %797 = vmatprep.subr.mxu0 %v881_v26 }
 0x215   :  { %798 = vmatpush3.xpose.msra.mxu0 %v466_v13 }
 0x218   :  { %800 = vmatmul.mubr.f32.vlgmr.msra.gmra.mxu0 %v482_v14 }
 0x2d8   :  { %v559_v20 = vpop.f32.mrf.mxu0 }
 0x2d9   :  { %v560_v21 = vadd.f32 %v559_v20, %v492_v19 }
 0x2da   :  { %v801_v22 = vpop.f32.mrf.mxu0 }
 0x2db   :  { %563 = vst [vmem:[#allocation8] sm:$0x1] %v560_v21 }
 0x2dc   :  { %862 = shalt.err (!%p859_p0)
}
 0x2dd   :  { %573 = dma.vmem_to_hbm [thread:$0]  %s571_s22, 16, %s1043_s7, [#allocation5]  }
 0x2de   :  { %875 = dma.done.wait [#allocation5], 16  }
 0x2df   :  { %876 = vsyncadd [#allocation5], 4294967280 }
 0x2e0   :  { %577 = vsyncpa [#allocation4], 1 }
 0x2e1   :  { %578 = vsyncpa [#allocation7], 1 }
 0x2e2   :  { %579 = vsyncpa [#allocation5], 1 }

</bundles_post_ra>
